<compile_context>
chip_gen: v7x
topology: tpu7x:2x2x1
jax: 0.10.0
libtpu: 0.0.40
codegen_flags: <defaults>
</compile_context>

<pallas_src>
import functools

import jax
import jax.numpy as jnp
from jax.experimental import pallas as pl
from jax.experimental.pallas import tpu as pltpu


# ---------------------------------------------------------------------------
# Kernel
# ---------------------------------------------------------------------------
def fused_mlp_kernel(*refs, num_layers: int, total_batch: int):
    # refs layout (inputs, outputs, scratch — all positional):
    #   [x, w0, b0, ..., w_{L-1}, b_{L-1}, gamma, beta,
    #    out, sum_s, sumsq_s, scale_s, shift_s]
    x_ref = refs[0]
    gamma_ref = refs[1 + 2 * num_layers]
    beta_ref = refs[2 + 2 * num_layers]
    o_ref = refs[3 + 2 * num_layers]
    sum_ref, sumsq_ref, scale_ref, shift_ref = refs[4 + 2 * num_layers:]

    p = pl.program_id(0)       # 0: stats pass, 1: normalize + output pass
    bi = pl.program_id(1)      # batch-tile index
    last_tile = pl.num_programs(1) - 1

    def hidden_stack():
        # Linear + ReLU stack (layers 0 .. L-2), activations carried in bf16.
        h = x_ref[...].astype(jnp.bfloat16)
        for i in range(num_layers - 1):
            w = refs[1 + 2 * i][...]          # bf16 [in, hid_pad] (pre-transposed)
            b = refs[2 + 2 * i][...]          # f32  [1, hid_pad]
            y = jnp.dot(h, w, preferred_element_type=jnp.float32) + b
            h = jnp.maximum(y, 0.0).astype(jnp.bfloat16)
        return h                              # bf16 [tile_b, hid_pad]

    @pl.when(p == 0)
    def _stats_pass():
        @pl.when(bi == 0)
        def _init():
            sum_ref[...] = jnp.zeros_like(sum_ref)
            sumsq_ref[...] = jnp.zeros_like(sumsq_ref)

        hf = hidden_stack().astype(jnp.float32)
        sum_ref[...] += jnp.sum(hf, axis=0, keepdims=True)
        sumsq_ref[...] += jnp.sum(hf * hf, axis=0, keepdims=True)

        @pl.when(bi == last_tile)
        def _finalize():
            inv_n = 1.0 / float(total_batch)
            mean = sum_ref[...] * inv_n
            var = jnp.maximum(sumsq_ref[...] * inv_n - mean * mean, 0.0)
            inv = jax.lax.rsqrt(var + 1e-5)
            g = gamma_ref[...]
            # Fold BN into a single scale/shift (padded lanes: gamma=beta=0).
            scale_ref[...] = g * inv
            shift_ref[...] = beta_ref[...] - g * mean * inv

    @pl.when(p == 1)
    def _output_pass():
        hf = hidden_stack().astype(jnp.float32)
        hn = hf * scale_ref[...] + shift_ref[...]
        w_last = refs[1 + 2 * (num_layers - 1)][...]   # bf16 [hid_pad, out_dim]
        b_last = refs[2 + 2 * (num_layers - 1)][...]   # f32  [1, out_dim]
        y = jnp.dot(hn.astype(jnp.bfloat16), w_last,
                    preferred_element_type=jnp.float32) + b_last
        o_ref[...] = y.astype(o_ref.dtype)


# ---------------------------------------------------------------------------
# Parameter construction / wrappers
# ---------------------------------------------------------------------------
def _round_up(n, m):
    return ((n + m - 1) // m) * m


def _pick_tile_b(batch):
    # MXU-height-friendly M tiles: prefer >=256 (v6e/v7x), >=128 (v5e).
    for t in (512, 256, 128, 64, 32, 16, 8):
        if batch % t == 0:
            return t
    raise ValueError("batch must be a multiple of 8 (sublane granularity)")


def init_mlp_params(key, input_dim, hidden_dim, output_dim, num_layers):
    assert num_layers > 1, "use a single Linear for a shallow MLP"
    h = [hidden_dim] * (num_layers - 1)
    dims = list(zip([input_dim] + h, h + [output_dim]))
    # NOTE(v6e/v7x): for hidden widths that land on odd multiples of 128,
    # rounding to 256 keeps the 256-wide MXU fully fed; 128 is optimal on v5e.
    hid_pad = _round_up(hidden_dim, 128)

    weights, biases = [], []
    for li, (n_in, n_out) in enumerate(dims):
        key, kw, kb = jax.random.split(key, 3)
        bound = 1.0 / (n_in ** 0.5)          # PyTorch nn.Linear default init
        w = jax.random.uniform(kw, (n_out, n_in), jnp.float32, -bound, bound)
        b = jax.random.uniform(kb, (n_out,), jnp.float32, -bound, bound)
        # First-layer K and last-layer N stay at their logical widths (no
        # wrapper-side x pad / output slice); hidden dims are lane-dense.
        in_p = n_in if li == 0 else hid_pad
        out_p = n_out if li == num_layers - 1 else hid_pad
        # INVARIANT: padded rows/cols MUST stay exactly zero.
        w_t = jnp.zeros((in_p, out_p), jnp.float32).at[:n_in, :n_out].set(w.T)
        b_p = jnp.zeros((1, out_p), jnp.float32).at[0, :n_out].set(b)
        weights.append(w_t.astype(jnp.bfloat16))   # bf16 weights for the MXU
        biases.append(b_p)                          # f32 biases

    gamma = jnp.zeros((1, hid_pad), jnp.float32).at[0, :hidden_dim].set(1.0)
    beta = jnp.zeros((1, hid_pad), jnp.float32)
    return {"weights": weights, "biases": biases,
            "bn_gamma": gamma, "bn_beta": beta}


@functools.partial(jax.jit, static_argnames=("num_layers", "output_dim"))
def mlp_forward(params, x, num_layers, output_dim):
    batch, in_dim = x.shape
    assert batch % 8 == 0, "batch must be a multiple of 8 (sublane granularity)"
    hid_pad = params["weights"][0].shape[1]

    tile_b = _pick_tile_b(batch)
    num_b_tiles = batch // tile_b

    operands = [x]
    for w, b in zip(params["weights"], params["biases"]):
        operands += [w, b]
    operands += [params["bn_gamma"], params["bn_beta"]]

    # Resident (DMA'd once) parameter operands.
    param_spec = pl.BlockSpec(memory_space=pltpu.MemorySpace.VMEM)
    in_specs = ([pl.BlockSpec((tile_b, in_dim), lambda p, b: (b, 0))]
                + [param_spec] * (2 * num_layers + 2))

    # Output block index = b * p: constant (0) during the stats pass (no wasted
    # writebacks), then one consecutive visit per tile during the output pass.
    out_spec = pl.BlockSpec((tile_b, output_dim), lambda p, b: (b * p, 0))

    # Advisory cost estimate (hidden stack runs twice: stats + output pass).
    wshapes = [w.shape for w in params["weights"]]
    hidden_flops = 2 * batch * sum(di * do for di, do in wshapes[:-1])
    flops = 2 * hidden_flops + 2 * batch * wshapes[-1][0] * wshapes[-1][1]
    param_bytes = (sum(w.size * w.dtype.itemsize for w in params["weights"])
                   + sum(b.size * b.dtype.itemsize for b in params["biases"])
                   + params["bn_gamma"].size * 4 + params["bn_beta"].size * 4)
    bytes_accessed = (2 * x.size * x.dtype.itemsize      # x read in both passes
                      + param_bytes
                      + batch * output_dim * 4)

    out = pl.pallas_call(
        functools.partial(fused_mlp_kernel,
                          num_layers=num_layers, total_batch=batch),
        out_shape=jax.ShapeDtypeStruct((batch, output_dim), jnp.float32),
        grid_spec=pltpu.PrefetchScalarGridSpec(
            num_scalar_prefetch=0,
            grid=(2, num_b_tiles),
            in_specs=in_specs,
            out_specs=out_spec,
            scratch_shapes=[pltpu.VMEM((1, hid_pad), jnp.float32)] * 4,
        ),
        compiler_params=pltpu.CompilerParams(
            # Batch axis stays "arbitrary": BN stats accumulate in shared
            # scratch across tiles (see TODO for a megacore-parallel variant).
            dimension_semantics=("arbitrary", "arbitrary"),
            vmem_limit_bytes=32 * 1024 * 1024,
        ),
        cost_estimate=pl.CostEstimate(flops=flops,
                                      transcendentals=hid_pad,
                                      bytes_accessed=bytes_accessed),
    )(*operands)
    return out


def mlp_forward_ref(params, x, num_layers, output_dim):
    """Pure-JAX reference mirroring the kernel arithmetic (bf16 activations,
    bf16 matmul operands with f32 accumulation, f32 BN statistics)."""
    h = x.astype(jnp.bfloat16)
    for i in range(num_layers - 1):
        w = params["weights"][i].astype(jnp.float32)
        y = jnp.dot(h.astype(jnp.float32), w) + params["biases"][i]
        h = jnp.maximum(y, 0.0).astype(jnp.bfloat16)
    hf = h.astype(jnp.float32)

    n = x.shape[0]
    mean = jnp.sum(hf, axis=0, keepdims=True) / n
    var = jnp.maximum(jnp.sum(hf * hf, axis=0, keepdims=True) / n - mean * mean, 0.0)
    inv = jax.lax.rsqrt(var + 1e-5)
    scale = params["bn_gamma"] * inv
    shift = params["bn_beta"] - params["bn_gamma"] * mean * inv
    hn = (hf * scale + shift).astype(jnp.bfloat16)

    w_last = params["weights"][-1].astype(jnp.float32)
    y = jnp.dot(hn.astype(jnp.float32), w_last) + params["biases"][-1]
    return y[:, :output_dim]


# ---------------------------------------------------------------------------
if __name__ == "__main__":
    input_dim, hidden_dim, output_dim, num_layers = 16, 32, 4, 3
    batch = 8

    key = jax.random.PRNGKey(0)
    key, kx = jax.random.split(key)
    x = jax.random.normal(kx, (batch, input_dim), jnp.float32)

    params = init_mlp_params(key, input_dim, hidden_dim, output_dim, num_layers)

    out = jax.block_until_ready(mlp_forward(params, x, num_layers, output_dim))
    ref = jax.block_until_ready(mlp_forward_ref(params, x, num_layers, output_dim))

    assert out.shape == (batch, output_dim)
    assert jnp.allclose(out, ref, atol=1e-3, rtol=1e-3), "mismatch vs JAX reference"

    print("KERNEL_OK")
</pallas_src>

<mosaic_0001>
module attributes {stable_mosaic.version = 11 : i64} {
  func.func @fused_mlp_kernel(%arg0: i32, %arg1: i32, %arg2: memref<8x16xf32, #tpu.memory_space<vmem>>, %arg3: memref<16x128xbf16, #tpu.memory_space<vmem>>, %arg4: memref<1x128xf32, #tpu.memory_space<vmem>>, %arg5: memref<128x128xbf16, #tpu.memory_space<vmem>>, %arg6: memref<1x128xf32, #tpu.memory_space<vmem>>, %arg7: memref<128x4xbf16, #tpu.memory_space<vmem>>, %arg8: memref<1x4xf32, #tpu.memory_space<vmem>>, %arg9: memref<1x128xf32, #tpu.memory_space<vmem>>, %arg10: memref<1x128xf32, #tpu.memory_space<vmem>>, %arg11: memref<8x4xf32, #tpu.memory_space<vmem>>, %arg12: memref<1x128xf32, #tpu.memory_space<vmem>>, %arg13: memref<1x128xf32, #tpu.memory_space<vmem>>, %arg14: memref<1x128xf32, #tpu.memory_space<vmem>>, %arg15: memref<1x128xf32, #tpu.memory_space<vmem>>) attributes {dimension_semantics = [#tpu.dimension_semantics<arbitrary>, #tpu.dimension_semantics<arbitrary>], iteration_bounds = array<i64: 2, 1>, scalar_prefetch = 0 : i64, scratch_operands = 4 : i64, tpu.core_type = #tpu.core_type<tc>, window_params = [{transform_indices = @transform_0, window_bounds = array<i64: 8, 16>}, {pipeline_mode = #tpu.pipeline_mode<synchronous>, transform_indices = @transform_1, window_bounds = array<i64: 16, 128>}, {pipeline_mode = #tpu.pipeline_mode<synchronous>, transform_indices = @transform_2, window_bounds = array<i64: 1, 128>}, {pipeline_mode = #tpu.pipeline_mode<synchronous>, transform_indices = @transform_3, window_bounds = array<i64: 128, 128>}, {pipeline_mode = #tpu.pipeline_mode<synchronous>, transform_indices = @transform_4, window_bounds = array<i64: 1, 128>}, {pipeline_mode = #tpu.pipeline_mode<synchronous>, transform_indices = @transform_5, window_bounds = array<i64: 128, 4>}, {pipeline_mode = #tpu.pipeline_mode<synchronous>, transform_indices = @transform_6, window_bounds = array<i64: 1, 4>}, {pipeline_mode = #tpu.pipeline_mode<synchronous>, transform_indices = @transform_7, window_bounds = array<i64: 1, 128>}, {pipeline_mode = #tpu.pipeline_mode<synchronous>, transform_indices = @transform_8, window_bounds = array<i64: 1, 128>}, {transform_indices = @transform_9, window_bounds = array<i64: 8, 4>}]} {
    %c0_i32 = arith.constant 0 : i32
    %0 = arith.cmpi eq, %arg0, %c0_i32 : i32
    %1 = arith.extui %0 : i1 to i32
    %c0_i32_0 = arith.constant 0 : i32
    %2 = arith.cmpi ne, %1, %c0_i32_0 : i32
    scf.if %2 {
      %c0_i32_2 = arith.constant 0 : i32
      %6 = arith.cmpi eq, %arg1, %c0_i32_2 : i32
      %7 = arith.extui %6 : i1 to i32
      %c0_i32_3 = arith.constant 0 : i32
      %8 = arith.cmpi ne, %7, %c0_i32_3 : i32
      scf.if %8 {
        %cst_28 = arith.constant 0.000000e+00 : f32
        %42 = vector.broadcast %cst_28 : f32 to vector<1x128xf32>
        %c0_29 = arith.constant 0 : index
        %c0_30 = arith.constant 0 : index
        %43 = vector.load %arg12[%c0_29, %c0_30] : memref<1x128xf32, #tpu.memory_space<vmem>>, vector<1x128xf32>
        tpu.vector_store %arg12[%c0_29, %c0_30], %42 {strides = array<i32>} : memref<1x128xf32, #tpu.memory_space<vmem>>, vector<1x128xf32>,
        %cst_31 = arith.constant 0.000000e+00 : f32
        %44 = vector.broadcast %cst_31 : f32 to vector<1x128xf32>
        %c0_32 = arith.constant 0 : index
        %c0_33 = arith.constant 0 : index
        %45 = vector.load %arg13[%c0_32, %c0_33] : memref<1x128xf32, #tpu.memory_space<vmem>>, vector<1x128xf32>
        tpu.vector_store %arg13[%c0_32, %c0_33], %44 {strides = array<i32>} : memref<1x128xf32, #tpu.memory_space<vmem>>, vector<1x128xf32>,
      } else {
      }
      %c0 = arith.constant 0 : index
      %c0_4 = arith.constant 0 : index
      %9 = vector.load %arg2[%c0, %c0_4] : memref<8x16xf32, #tpu.memory_space<vmem>>, vector<8x16xf32>
      %10 = arith.truncf %9 : vector<8x16xf32> to vector<8x16xbf16>
      %c0_5 = arith.constant 0 : index
      %c0_6 = arith.constant 0 : index
      %11 = vector.load %arg3[%c0_5, %c0_6] : memref<16x128xbf16, #tpu.memory_space<vmem>>, vector<16x128xbf16>
      %c0_7 = arith.constant 0 : index
      %c0_8 = arith.constant 0 : index
      %12 = vector.load %arg4[%c0_7, %c0_8] : memref<1x128xf32, #tpu.memory_space<vmem>>, vector<1x128xf32>
      %cst = arith.constant dense<0.000000e+00> : vector<8x128xf32>
      %13 = tpu.matmul %10, %11, %cst {dimension_numbers = #tpu.dot_dimension_numbers<[1], [0], [0], [1], [0, 0, 1, 1], [], []>} : vector<8x16xbf16>, vector<16x128xbf16>, vector<8x128xf32> -> vector<8x128xf32>
      %14 = vector.broadcast %12 : vector<1x128xf32> to vector<8x128xf32>
      %15 = arith.addf %13, %14 : vector<8x128xf32>
      %cst_9 = arith.constant 0.000000e+00 : f32
      %16 = vector.broadcast %cst_9 : f32 to vector<8x128xf32>
      %17 = arith.maximumf %15, %16 : vector<8x128xf32>
      %18 = arith.truncf %17 : vector<8x128xf32> to vector<8x128xbf16>
      %c0_10 = arith.constant 0 : index
      %c0_11 = arith.constant 0 : index
      %19 = vector.load %arg5[%c0_10, %c0_11] : memref<128x128xbf16, #tpu.memory_space<vmem>>, vector<128x128xbf16>
      %c0_12 = arith.constant 0 : index
      %c0_13 = arith.constant 0 : index
      %20 = vector.load %arg6[%c0_12, %c0_13] : memref<1x128xf32, #tpu.memory_space<vmem>>, vector<1x128xf32>
      %cst_14 = arith.constant dense<0.000000e+00> : vector<8x128xf32>
      %21 = tpu.matmul %18, %19, %cst_14 {dimension_numbers = #tpu.dot_dimension_numbers<[1], [0], [0], [1], [0, 0, 1, 1], [], []>} : vector<8x128xbf16>, vector<128x128xbf16>, vector<8x128xf32> -> vector<8x128xf32>
      %22 = vector.broadcast %20 : vector<1x128xf32> to vector<8x128xf32>
      %23 = arith.addf %21, %22 : vector<8x128xf32>
      %cst_15 = arith.constant 0.000000e+00 : f32
      %24 = vector.broadcast %cst_15 : f32 to vector<8x128xf32>
      %25 = arith.maximumf %23, %24 : vector<8x128xf32>
      %26 = arith.truncf %25 : vector<8x128xf32> to vector<8x128xbf16>
      %27 = arith.extf %26 : vector<8x128xbf16> to vector<8x128xf32>
      %c0_16 = arith.constant 0 : index
      %c0_17 = arith.constant 0 : index
      %28 = vector.load %arg12[%c0_16, %c0_17] : memref<1x128xf32, #tpu.memory_space<vmem>>, vector<1x128xf32>
      %cst_18 = arith.constant dense<0.000000e+00> : vector<128xf32>
      %29 = vector.multi_reduction <add>, %27, %cst_18 [0] : vector<8x128xf32> to vector<128xf32>
      %30 = vector.shape_cast %29 : vector<128xf32> to vector<1x128xf32>
      %31 = arith.addf %28, %30 : vector<1x128xf32>
      %c0_19 = arith.constant 0 : index
      %c0_20 = arith.constant 0 : index
      %32 = vector.load %arg12[%c0_19, %c0_20] : memref<1x128xf32, #tpu.memory_space<vmem>>, vector<1x128xf32>
      tpu.vector_store %arg12[%c0_19, %c0_20], %31 {strides = array<i32>} : memref<1x128xf32, #tpu.memory_space<vmem>>, vector<1x128xf32>,
      %c0_21 = arith.constant 0 : index
      %c0_22 = arith.constant 0 : index
      %33 = vector.load %arg13[%c0_21, %c0_22] : memref<1x128xf32, #tpu.memory_space<vmem>>, vector<1x128xf32>
      %34 = arith.mulf %27, %27 : vector<8x128xf32>
      %cst_23 = arith.constant dense<0.000000e+00> : vector<128xf32>
      %35 = vector.multi_reduction <add>, %34, %cst_23 [0] : vector<8x128xf32> to vector<128xf32>
      %36 = vector.shape_cast %35 : vector<128xf32> to vector<1x128xf32>
      %37 = arith.addf %33, %36 : vector<1x128xf32>
      %c0_24 = arith.constant 0 : index
      %c0_25 = arith.constant 0 : index
      %38 = vector.load %arg13[%c0_24, %c0_25] : memref<1x128xf32, #tpu.memory_space<vmem>>, vector<1x128xf32>
      tpu.vector_store %arg13[%c0_24, %c0_25], %37 {strides = array<i32>} : memref<1x128xf32, #tpu.memory_space<vmem>>, vector<1x128xf32>,
      %c0_i32_26 = arith.constant 0 : i32
      %39 = arith.cmpi eq, %arg1, %c0_i32_26 : i32
      %40 = arith.extui %39 : i1 to i32
      %c0_i32_27 = arith.constant 0 : i32
      %41 = arith.cmpi ne, %40, %c0_i32_27 : i32
      scf.if %41 {
        %c0_28 = arith.constant 0 : index
        %c0_29 = arith.constant 0 : index
        %42 = vector.load %arg12[%c0_28, %c0_29] : memref<1x128xf32, #tpu.memory_space<vmem>>, vector<1x128xf32>
        %cst_30 = arith.constant 1.250000e-01 : f32
        %43 = vector.broadcast %cst_30 : f32 to vector<1x128xf32>
        %44 = arith.mulf %42, %43 : vector<1x128xf32>
        %c0_31 = arith.constant 0 : index
        %c0_32 = arith.constant 0 : index
        %45 = vector.load %arg13[%c0_31, %c0_32] : memref<1x128xf32, #tpu.memory_space<vmem>>, vector<1x128xf32>
        %cst_33 = arith.constant 1.250000e-01 : f32
        %46 = vector.broadcast %cst_33 : f32 to vector<1x128xf32>
        %47 = arith.mulf %45, %46 : vector<1x128xf32>
        %48 = arith.mulf %44, %44 : vector<1x128xf32>
        %49 = arith.subf %47, %48 : vector<1x128xf32>
        %cst_34 = arith.constant 0.000000e+00 : f32
        %50 = vector.broadcast %cst_34 : f32 to vector<1x128xf32>
        %51 = arith.maximumf %49, %50 : vector<1x128xf32>
        %cst_35 = arith.constant 9.99999974E-6 : f32
        %52 = vector.broadcast %cst_35 : f32 to vector<1x128xf32>
        %53 = arith.addf %51, %52 : vector<1x128xf32>
        %54 = math.rsqrt %53 : vector<1x128xf32>
        %c0_36 = arith.constant 0 : index
        %c0_37 = arith.constant 0 : index
        %55 = vector.load %arg9[%c0_36, %c0_37] : memref<1x128xf32, #tpu.memory_space<vmem>>, vector<1x128xf32>
        %56 = arith.mulf %55, %54 : vector<1x128xf32>
        %c0_38 = arith.constant 0 : index
        %c0_39 = arith.constant 0 : index
        %57 = vector.load %arg14[%c0_38, %c0_39] : memref<1x128xf32, #tpu.memory_space<vmem>>, vector<1x128xf32>
        tpu.vector_store %arg14[%c0_38, %c0_39], %56 {strides = array<i32>} : memref<1x128xf32, #tpu.memory_space<vmem>>, vector<1x128xf32>,
        %c0_40 = arith.constant 0 : index
        %c0_41 = arith.constant 0 : index
        %58 = vector.load %arg10[%c0_40, %c0_41] : memref<1x128xf32, #tpu.memory_space<vmem>>, vector<1x128xf32>
        %59 = arith.mulf %55, %44 : vector<1x128xf32>
        %60 = arith.mulf %59, %54 : vector<1x128xf32>
        %61 = arith.subf %58, %60 : vector<1x128xf32>
        %c0_42 = arith.constant 0 : index
        %c0_43 = arith.constant 0 : index
        %62 = vector.load %arg15[%c0_42, %c0_43] : memref<1x128xf32, #tpu.memory_space<vmem>>, vector<1x128xf32>
        tpu.vector_store %arg15[%c0_42, %c0_43], %61 {strides = array<i32>} : memref<1x128xf32, #tpu.memory_space<vmem>>, vector<1x128xf32>,
      } else {
      }
    } else {
    }
    %c1_i32 = arith.constant 1 : i32
    %3 = arith.cmpi eq, %arg0, %c1_i32 : i32
    %4 = arith.extui %3 : i1 to i32
    %c0_i32_1 = arith.constant 0 : i32
    %5 = arith.cmpi ne, %4, %c0_i32_1 : i32
    scf.if %5 {
      %c0 = arith.constant 0 : index
      %c0_2 = arith.constant 0 : index
      %6 = vector.load %arg2[%c0, %c0_2] : memref<8x16xf32, #tpu.memory_space<vmem>>, vector<8x16xf32>
      %7 = arith.truncf %6 : vector<8x16xf32> to vector<8x16xbf16>
      %c0_3 = arith.constant 0 : index
      %c0_4 = arith.constant 0 : index
      %8 = vector.load %arg3[%c0_3, %c0_4] : memref<16x128xbf16, #tpu.memory_space<vmem>>, vector<16x128xbf16>
      %c0_5 = arith.constant 0 : index
      %c0_6 = arith.constant 0 : index
      %9 = vector.load %arg4[%c0_5, %c0_6] : memref<1x128xf32, #tpu.memory_space<vmem>>, vector<1x128xf32>
      %cst = arith.constant dense<0.000000e+00> : vector<8x128xf32>
      %10 = tpu.matmul %7, %8, %cst {dimension_numbers = #tpu.dot_dimension_numbers<[1], [0], [0], [1], [0, 0, 1, 1], [], []>} : vector<8x16xbf16>, vector<16x128xbf16>, vector<8x128xf32> -> vector<8x128xf32>
      %11 = vector.broadcast %9 : vector<1x128xf32> to vector<8x128xf32>
      %12 = arith.addf %10, %11 : vector<8x128xf32>
      %cst_7 = arith.constant 0.000000e+00 : f32
      %13 = vector.broadcast %cst_7 : f32 to vector<8x128xf32>
      %14 = arith.maximumf %12, %13 : vector<8x128xf32>
      %15 = arith.truncf %14 : vector<8x128xf32> to vector<8x128xbf16>
      %c0_8 = arith.constant 0 : index
      %c0_9 = arith.constant 0 : index
      %16 = vector.load %arg5[%c0_8, %c0_9] : memref<128x128xbf16, #tpu.memory_space<vmem>>, vector<128x128xbf16>
      %c0_10 = arith.constant 0 : index
      %c0_11 = arith.constant 0 : index
      %17 = vector.load %arg6[%c0_10, %c0_11] : memref<1x128xf32, #tpu.memory_space<vmem>>, vector<1x128xf32>
      %cst_12 = arith.constant dense<0.000000e+00> : vector<8x128xf32>
      %18 = tpu.matmul %15, %16, %cst_12 {dimension_numbers = #tpu.dot_dimension_numbers<[1], [0], [0], [1], [0, 0, 1, 1], [], []>} : vector<8x128xbf16>, vector<128x128xbf16>, vector<8x128xf32> -> vector<8x128xf32>
      %19 = vector.broadcast %17 : vector<1x128xf32> to vector<8x128xf32>
      %20 = arith.addf %18, %19 : vector<8x128xf32>
      %cst_13 = arith.constant 0.000000e+00 : f32
      %21 = vector.broadcast %cst_13 : f32 to vector<8x128xf32>
      %22 = arith.maximumf %20, %21 : vector<8x128xf32>
      %23 = arith.truncf %22 : vector<8x128xf32> to vector<8x128xbf16>
      %24 = arith.extf %23 : vector<8x128xbf16> to vector<8x128xf32>
      %c0_14 = arith.constant 0 : index
      %c0_15 = arith.constant 0 : index
      %25 = vector.load %arg14[%c0_14, %c0_15] : memref<1x128xf32, #tpu.memory_space<vmem>>, vector<1x128xf32>
      %26 = vector.broadcast %25 : vector<1x128xf32> to vector<8x128xf32>
      %27 = arith.mulf %24, %26 : vector<8x128xf32>
      %c0_16 = arith.constant 0 : index
      %c0_17 = arith.constant 0 : index
      %28 = vector.load %arg15[%c0_16, %c0_17] : memref<1x128xf32, #tpu.memory_space<vmem>>, vector<1x128xf32>
      %29 = vector.broadcast %28 : vector<1x128xf32> to vector<8x128xf32>
      %30 = arith.addf %27, %29 : vector<8x128xf32>
      %c0_18 = arith.constant 0 : index
      %c0_19 = arith.constant 0 : index
      %31 = vector.load %arg7[%c0_18, %c0_19] : memref<128x4xbf16, #tpu.memory_space<vmem>>, vector<128x4xbf16>
      %c0_20 = arith.constant 0 : index
      %c0_21 = arith.constant 0 : index
      %32 = vector.load %arg8[%c0_20, %c0_21] : memref<1x4xf32, #tpu.memory_space<vmem>>, vector<1x4xf32>
      %33 = arith.truncf %30 : vector<8x128xf32> to vector<8x128xbf16>
      %cst_22 = arith.constant dense<0.000000e+00> : vector<8x4xf32>
      %34 = tpu.matmul %33, %31, %cst_22 {dimension_numbers = #tpu.dot_dimension_numbers<[1], [0], [0], [1], [0, 0, 1, 1], [], []>} : vector<8x128xbf16>, vector<128x4xbf16>, vector<8x4xf32> -> vector<8x4xf32>
      %35 = vector.broadcast %32 : vector<1x4xf32> to vector<8x4xf32>
      %36 = arith.addf %34, %35 : vector<8x4xf32>
      %c0_23 = arith.constant 0 : index
      %c0_24 = arith.constant 0 : index
      %37 = vector.load %arg11[%c0_23, %c0_24] : memref<8x4xf32, #tpu.memory_space<vmem>>, vector<8x4xf32>
      tpu.vector_store %arg11[%c0_23, %c0_24], %36 {strides = array<i32>} : memref<8x4xf32, #tpu.memory_space<vmem>>, vector<8x4xf32>,
    } else {
    }
    return
  }
  func.func @transform_0(%arg0: i32, %arg1: i32) -> (i32, i32) {
    %c0_i32 = arith.constant 0 : i32
    %c0_i32_0 = arith.constant 0 : i32
    return %arg1, %c0_i32 : i32, i32
  }
  func.func @transform_1(%arg0: i32, %arg1: i32) -> (i32, i32) {
    %c0_i32 = arith.constant 0 : i32
    %c0_i32_0 = arith.constant 0 : i32
    %c0_i32_1 = arith.constant 0 : i32
    return %c0_i32, %c0_i32_0 : i32, i32
  }
  func.func @transform_2(%arg0: i32, %arg1: i32) -> (i32, i32) {
    %c0_i32 = arith.constant 0 : i32
    %c0_i32_0 = arith.constant 0 : i32
    %c0_i32_1 = arith.constant 0 : i32
    return %c0_i32, %c0_i32_0 : i32, i32
  }
  func.func @transform_3(%arg0: i32, %arg1: i32) -> (i32, i32) {
    %c0_i32 = arith.constant 0 : i32
    %c0_i32_0 = arith.constant 0 : i32
    %c0_i32_1 = arith.constant 0 : i32
    return %c0_i32, %c0_i32_0 : i32, i32
  }
  func.func @transform_4(%arg0: i32, %arg1: i32) -> (i32, i32) {
    %c0_i32 = arith.constant 0 : i32
    %c0_i32_0 = arith.constant 0 : i32
    %c0_i32_1 = arith.constant 0 : i32
    return %c0_i32, %c0_i32_0 : i32, i32
  }
  func.func @transform_5(%arg0: i32, %arg1: i32) -> (i32, i32) {
    %c0_i32 = arith.constant 0 : i32
    %c0_i32_0 = arith.constant 0 : i32
    %c0_i32_1 = arith.constant 0 : i32
    return %c0_i32, %c0_i32_0 : i32, i32
  }
  func.func @transform_6(%arg0: i32, %arg1: i32) -> (i32, i32) {
    %c0_i32 = arith.constant 0 : i32
    %c0_i32_0 = arith.constant 0 : i32
    %c0_i32_1 = arith.constant 0 : i32
    return %c0_i32, %c0_i32_0 : i32, i32
  }
  func.func @transform_7(%arg0: i32, %arg1: i32) -> (i32, i32) {
    %c0_i32 = arith.constant 0 : i32
    %c0_i32_0 = arith.constant 0 : i32
    %c0_i32_1 = arith.constant 0 : i32
    return %c0_i32, %c0_i32_0 : i32, i32
  }
  func.func @transform_8(%arg0: i32, %arg1: i32) -> (i32, i32) {
    %c0_i32 = arith.constant 0 : i32
    %c0_i32_0 = arith.constant 0 : i32
    %c0_i32_1 = arith.constant 0 : i32
    return %c0_i32, %c0_i32_0 : i32, i32
  }
  func.func @transform_9(%arg0: i32, %arg1: i32) -> (i32, i32) {
    %0 = arith.muli %arg1, %arg0 : i32
    %c0_i32 = arith.constant 0 : i32
    %c0_i32_0 = arith.constant 0 : i32
    return %0, %c0_i32 : i32, i32
  }
}

</mosaic_0001>

<bundles_post_ra>
// kernel: mlp_forward.1
= control target key start
LH: loop header
LB: loop body
LE: loop exit
PB: predicated region body
PF: predicated region fallthrough
CT: control target
= control target key end

     0   :  { %s1234_s30 = smov 0   ;;  %s1236_s10 = smov 0   ;;  %s1393_s0 = inlined_call_operand.vmem [shape: f32[8,16], index: 0, kind: input, shape index: {}]   ;;  %s1394_s1 = inlined_call_operand.vmem [shape: bf16[16,128], index: 1, kind: input, shape index: {}]   ;;  %s1395_s2 = inlined_call_operand.vmem [shape: f32[1,128], index: 2, kind: input, shape index: {}]   ;;  %s1396_s3 = inlined_call_operand.vmem [shape: bf16[128,128], index: 3, kind: input, shape index: {}]   ;;  %s1397_s4 = inlined_call_operand.vmem [shape: f32[1,128], index: 4, kind: input, shape index: {}]   ;;  %s1398_s5 = inlined_call_operand.vmem [shape: bf16[128,4], index: 5, kind: input, shape index: {}]   ;;  %s1399_s6 = inlined_call_operand.vmem [shape: f32[1,4], index: 6, kind: input, shape index: {}]   ;;  %s1400_s7 = inlined_call_operand.vmem [shape: f32[1,128], index: 7, kind: input, shape index: {}]   ;;  %s1401_s8 = inlined_call_operand.vmem [shape: f32[1,128], index: 8, kind: input, shape index: {}]   ;;  %s1402_s9 = inlined_call_operand.vmem [shape: f32[8,4], index: 9, kind: output, shape index: {}]  }
   0x1   :  { %s1238_s11 = smov 0  }
   0x2 LB: > { %s31_s12 = sadd.s32 1, %s1174_s10  ;;  %p955_p0 = scmp.ge.s32.totalorder %s1178_s11, 1  ;;  %s1178_s11 = sphi %s1238_s11, %s19_s11   ;;  %s1174_s10 = sphi %s1236_s10, %s1404_s10   ;;  %s1170_s30 = sphi %s1234_s30, %s1403_s30  }
   0x3   : > { %p33_p1 = scmp.ge.s32.totalorder %s31_s12, 2  ;;  %p300_p2 = scmp.lt.s32.totalorder %s1178_s11, 3 }
   0x5   : > { %s1406_s12 = smov (%p33_p1, %s31_s12), 0  ;;  %p301_p3 = pnand %p955_p0, %p300_p2 }
   0x6   : > { %p956_p4 = scmp.ne.s32.totalorder (!%p301_p3), %s1170_s30, 0 }
   0x7   : > { %304 = sbr.rel (%p301_p3) target bundleno = 1170 (0x492), region = 56 }
   0xe   : > { %349 = sbr.rel (%p956_p4) target bundleno = 505 (0x1f9), region = 60  ;;  %v1128_v0 = vld [vmem:[%s1394_s1] sm:$0xff] (!%p956_p4)   ;;  %v1180_v1 = vmov (!%p956_p4), 0.0   ;;  %vm373_vm0 = vcmask (!%p956_p4), 130048   ;;  %vm1181_vm1 = vmmov (!%p956_p4), 0   ;;  %v1130_v5 = vld [vmem:[%s1396_s3 + $0x8] sm:$0xff] (!%p956_p4)  }
   0xf   : > { %1028 = vmatprep.subr.bf16.mxu0 (!%p956_p4), %v1180_v1  ;;  %354 = vst [vmem:[#allocation2] sm:$0x1] (!%p956_p4), %v1180_v1  ;;  %355 = vst [vmem:[#allocation3] sm:$0x1] (!%p956_p4), %v1180_v1  ;;  %v356_v2 = vld [vmem:[%s1393_s0] sm:$0xff] (!%p956_p4)  ;;  %1034 = vmatprep.subr.bf16.mxu1 (!%p956_p4), %v1180_v1  ;;  %v1131_v6 = vld [vmem:[%s1396_s3 + $0x10] sm:$0xff] (!%p956_p4)  }
  0x10   : > { %v1129_v3 = vld [vmem:[%s1396_s3] sm:$0xff] (!%p956_p4)   ;;  %1029 = vmatpush3.bf16.msra.mxu0 (!%p956_p4), %v1128_v0  ;;  %1030 = vmatprep.mubr.msk.bf16.mxu0 (!%p956_p4), %vm1181_vm1, %v1180_v1  ;;  %v357_v4 = vpack.c.bf16 (!%p956_p4), %v356_v2, %v356_v2  ;;  %v1132_v7 = vld [vmem:[%s1396_s3 + $0x18] sm:$0xff] (!%p956_p4)   ;;  %v1134_v9 = vld [vmem:[%s1396_s3 + $0x28] sm:$0xff] (!%p956_p4)  }
  0x11   : > { %1035 = vmatpush3.bf16.msra.mxu1 (!%p956_p4), %v1129_v3  ;;  %1050 = vmatprep.mubr.msk.bf16.mxu1 (!%p956_p4), %vm1181_vm1, %v1180_v1  ;;  %v1133_v8 = vld [vmem:[%s1396_s3 + $0x20] sm:$0xff] (!%p956_p4)   ;;  %v1135_v10 = vld [vmem:[%s1396_s3 + $0x30] sm:$0xff] (!%p956_p4)   ;;  %v1136_v11 = vld [vmem:[%s1396_s3 + $0x38] sm:$0xff] (!%p956_p4)  }
  0x12   : > { %1036 = vmatprep.subr.bf16.mxu1 (!%p956_p4), %v1180_v1  ;;  %v957_v12 = vld [vmem:[%s1395_s2] ss:$0 sm:$0xff] (!%p956_p4) }
  0x13   : > { %1031 = vmatmul.mubr.msk.bf16.vlgmr.msra.gmra.mrb[0].mxu0 (!%p956_p4), %vm373_vm0, %v357_v4  ;;  %v960_v20 = vld [vmem:[%s1397_s4] ss:$0 sm:$0xff] (!%p956_p4) }
  0x14   : > { %v564_v54 = vld [vmem:[%s1400_s7] sm:$0x1] (!%p956_p4) }
  0x15   : > { %1037 = vmatpush3.bf16.msra.mxu1 %v1130_v5  ;;  %v567_v57 = vld [vmem:[%s1401_s8] sm:$0x1] }
  0x16   : > { %1038 = vmatprep.subr.bf16.mxu1 %v1180_v1  ;;  %v533_v39 = vld [vmem:[#allocation2] sm:$0x1]  ;;  %v542_v42 = vld [vmem:[#allocation3] sm:$0x1] }
  0x19   : > { %1039 = vmatpush3.bf16.msra.mxu1 %v1131_v6 }
  0x1a   : > { %1040 = vmatprep.subr.bf16.mxu1 %v1180_v1 }
  0x1d   : > { %1041 = vmatpush3.bf16.msra.mxu1 %v1132_v7 }
  0x1e   : > { %1042 = vmatprep.subr.bf16.mxu1 %v1180_v1 }
  0x21   : > { %1043 = vmatpush3.bf16.msra.mxu1 %v1133_v8 }
  0x22   : > { %1044 = vmatprep.subr.bf16.mxu1 %v1180_v1 }
  0x25   : > { %1045 = vmatpush3.bf16.msra.mxu1 %v1134_v9 }
  0x26   : > { %1046 = vmatprep.subr.bf16.mxu1 %v1180_v1 }
  0x29   : > { %1047 = vmatpush3.bf16.msra.mxu1 %v1135_v10 }
  0x2a   : > { %1048 = vmatprep.subr.bf16.mxu1 %v1180_v1 }
  0x2d   : > { %1049 = vmatpush3.bf16.msra.mxu1 %v1136_v11 }
  0xe6   : > { %v411_v13 = vpop.f32.mrb[0].mxu0 }
  0xe7   : > { %v412_v14 = vadd.f32 %v957_v12, %v411_v13  ;;  %v1032_v15 = vpop.f32.mrb[1].mxu0 }
  0xe8   : > { %v414_v16 = vpop.f32.mrb[2].mxu0 }
  0xe9   : > { %v417_v17 = vmax.f32 %v412_v14, 0.0  ;;  %v1033_v18 = vpop.f32.mrb[3].mxu0 }
  0xeb   : > { %v418_v19 = vpack.c.bf16 %v417_v17, %v417_v17 }
  0xed   : > { %1051 = vmatmul.mubr.bf16.vlgmr.msra.gmra.mrb[0].mxu1 %v418_v19 }
 0x1c0   : > { %v524_v21 = vpop.f32.mrb[0].mxu1 }
 0x1c1   : > { %v525_v22 = vadd.f32 %v960_v20, %v524_v21  ;;  %v1052_v23 = vpop.f32.mrb[1].mxu1 }
 0x1c2   : > { %v527_v24 = vpop.f32.mrb[2].mxu1 }
 0x1c3   : > { %v530_v25 = vmax.f32 %v525_v22, 0.0  ;;  %v1053_v26 = vpop.f32.mrb[3].mxu1 }
 0x1c5   : > { %v531_v27 = vpack.c.bf16 %v530_v25, %v530_v25 }
 0x1c7   : > { %v532_v28 = vunpack.c.l.bf16 %v531_v27 }
 0x1c9   : > { %v534_v29 = vrot.slane %v532_v28, 4  ;;  %v543_v30 = vmul.f32 %v532_v28, %v532_v28 }
 0x1cb   : > { %v535_v31 = vadd.f32 %v534_v29, %v532_v28  ;;  %v544_v32 = vrot.slane %v543_v30, 4 }
 0x1cd   : > { %v536_v33 = vrot.slane %v535_v31, 2  ;;  %v545_v34 = vadd.f32 %v544_v32, %v543_v30 }
 0x1cf   : > { %v537_v35 = vadd.f32 %v536_v33, %v535_v31  ;;  %v546_v36 = vrot.slane %v545_v34, 2 }
 0x1d1   : > { %v538_v37 = vrot.slane %v537_v35, 1  ;;  %v547_v38 = vadd.f32 %v546_v36, %v545_v34 }
 0x1d3   : > { %v539_v40 = vadd.f32 %v538_v37, %v537_v35  ;;  %v548_v41 = vrot.slane %v547_v38, 1 }
 0x1d5   : > { %v540_v43 = vadd.f32 %v539_v40, %v533_v39  ;;  %v549_v44 = vadd.f32 %v548_v41, %v547_v38 }
 0x1d7   : > { %541 = vst [vmem:[#allocation2] sm:$0x1] %v540_v43  ;;  %v550_v45 = vadd.f32 %v549_v44, %v542_v42 }
 0x1d9   : > { %551 = vst [vmem:[#allocation3] sm:$0x1] %v550_v45 }
 0x1de   : > { %v555_v46 = vld [vmem:[#allocation2] sm:$0x1] }
 0x1df   : > { %v556_v47 = vmul.f32 0.125, %v555_v46 }
 0x1e0   : > { %v557_v48 = vld [vmem:[#allocation3] sm:$0x1] }
 0x1e1   : > { %v558_v49 = vmul.f32 0.125, %v557_v48  ;;  %v559_v50 = vmul.f32 %v556_v47, %v556_v47  ;;  %v568_v55 = vmul.f32 %v564_v54, %v556_v47 }
 0x1e3   : > { %v560_v51 = vsub.f32 %v558_v49, %v559_v50 }
 0x1e5   : > { %v561_v52 = vmax.f32 %v560_v51, 0.0 }
 0x1e7   : > { %v562_v53 = vadd.f32 1e-05, %v561_v52 }
 0x1e9   : > { %1137 = vrsqrt.f32 %v562_v53 }
 0x1f3   : > { %v1138_v56 = vpop.eup %1137 }
 0x1f4   : > { %v565_v58 = vmul.f32 %v1138_v56, %v564_v54  ;;  %v569_v59 = vmul.f32 %v1138_v56, %v568_v55 }
 0x1f6   : > { %566 = vst [vmem:[#allocation4] sm:$0x1] %v565_v58  ;;  %v570_v60 = vsub.f32 %v567_v57, %v569_v59 }
 0x1f8   : > { %571 = vst [vmem:[#allocation5] sm:$0x1] %v570_v60 }
 0x1f9 PF: > { %p969_p5 = scmp.ne.s32.totalorder %s1170_s30, 1 }
 0x1fa   : > { %v1139_v61 = vld [vmem:[%s1394_s1] sm:$0xff] (!%p969_p5)   ;;  %v1182_v62 = vmov (!%p969_p5), 0.0   ;;  %vm593_vm2 = vcmask (!%p969_p5), 130048   ;;  %vm1183_vm3 = vmmov (!%p969_p5), 0   ;;  %v1141_v2 = vld [vmem:[%s1396_s3 + $0x8] sm:$0xff] (!%p969_p5)   ;;  %v1142_v3 = vld [vmem:[%s1396_s3 + $0x10] sm:$0xff] (!%p969_p5)  }
 0x1fb   : > { %575 = sbr.rel (%p969_p5) target bundleno = 1170 (0x492), region = 72  ;;  %1054 = vmatprep.subr.bf16.mxu0 (!%p969_p5), %v1182_v62  ;;  %v576_v63 = vld [vmem:[%s1393_s0] sm:$0xff] (!%p969_p5)  ;;  %1060 = vmatprep.subr.bf16.mxu1 (!%p969_p5), %v1182_v62  ;;  %v1143_v4 = vld [vmem:[%s1396_s3 + $0x18] sm:$0xff] (!%p969_p5)   ;;  %v1145_v6 = vld [vmem:[%s1396_s3 + $0x28] sm:$0xff] (!%p969_p5)   ;;  %vm881_vm4 = vcmask (!%p969_p5), 31744  }
 0x1fc   : > { %v1140_v0 = vld [vmem:[%s1396_s3] sm:$0xff] (!%p969_p5)   ;;  %1055 = vmatpush3.bf16.msra.mxu0 (!%p969_p5), %v1139_v61  ;;  %1056 = vmatprep.mubr.msk.bf16.mxu0 (!%p969_p5), %vm1183_vm3, %v1182_v62  ;;  %v577_v1 = vpack.c.bf16 (!%p969_p5), %v576_v63, %v576_v63  ;;  %v1146_v7 = vld [vmem:[%s1396_s3 + $0x30] sm:$0xff] (!%p969_p5)   ;;  %v1147_v8 = vld [vmem:[%s1396_s3 + $0x38] sm:$0xff] (!%p969_p5)  }
 0x1fd   : > { %1061 = vmatpush3.bf16.msra.mxu1 (!%p969_p5), %v1140_v0  ;;  %1076 = vmatprep.mubr.msk.bf16.mxu1 (!%p969_p5), %vm1183_vm3, %v1182_v62  ;;  %v1144_v5 = vld [vmem:[%s1396_s3 + $0x20] sm:$0xff] (!%p969_p5)   ;;  %v1149_v10 = vld [vmem:[%s1398_s5 + $0x8] sm:$0xff] (!%p969_p5)   ;;  %v1150_v11 = vld [vmem:[%s1398_s5 + $0x10] sm:$0xff] (!%p969_p5)  }
 0x1fe   : > { %1062 = vmatprep.subr.bf16.mxu1 (!%p969_p5), %v1182_v62  ;;  %1080 = vmatprep.subr.bf16.mxu0 (!%p969_p5), %v1182_v62  ;;  %v1148_v9 = vld [vmem:[%s1398_s5] sm:$0xff] (!%p969_p5)   ;;  %v1151_v12 = vld [vmem:[%s1398_s5 + $0x18] sm:$0xff] (!%p969_p5)   ;;  %v1153_v22 = vld [vmem:[%s1398_s5 + $0x28] sm:$0xff] (!%p969_p5)  }
 0x1ff   : > { %1057 = vmatmul.mubr.msk.bf16.vlgmr.msra.gmra.mrb[0].mxu0 (!%p969_p5), %vm593_vm2, %v577_v1  ;;  %v970_v13 = vld [vmem:[%s1395_s2] ss:$0 sm:$0xff] (!%p969_p5)  ;;  %v1154_v23 = vld [vmem:[%s1398_s5 + $0x30] sm:$0xff] (!%p969_p5)   ;;  %v1155_v24 = vld [vmem:[%s1398_s5 + $0x38] sm:$0xff] (!%p969_p5)  }
 0x200   : > { %1096 = vmatprep.mubr.msk.bf16.mxu0 (!%p969_p5), %vm1183_vm3, %v1182_v62  ;;  %1081 = vmatpush3.bf16.msra.mxu0 (!%p969_p5), %v1148_v9  ;;  %v1152_v21 = vld [vmem:[%s1398_s5 + $0x20] sm:$0xff] (!%p969_p5)  }
 0x201   : > { %1063 = vmatpush3.bf16.msra.mxu1 (!%p969_p5), %v1141_v2  ;;  %1082 = vmatprep.subr.bf16.mxu0 (!%p969_p5), %v1182_v62  ;;  %v973_v25 = vld [vmem:[%s1397_s4] ss:$0 sm:$0xff] (!%p969_p5)  ;;  %v982_v33 = vld [vmem:[#allocation4] ss:$0 sm:$0xff] (!%p969_p5)  ;;  %v983_v35 = vld [vmem:[#allocation5] ss:$0 sm:$0xff] (!%p969_p5) }
 0x202   : > { %1064 = vmatprep.subr.bf16.mxu1 %v1182_v62  ;;  %v984_v39 = vld [vmem:[%s1399_s6] ss:$0 sm:$0xff] }
 0x204   : > { %1083 = vmatpush3.bf16.msra.mxu0 %v1149_v10 }
 0x205   : > { %1065 = vmatpush3.bf16.msra.mxu1 %v1142_v3  ;;  %1084 = vmatprep.subr.bf16.mxu0 %v1182_v62 }
 0x206   : > { %1066 = vmatprep.subr.bf16.mxu1 %v1182_v62 }
 0x208   : > { %1085 = vmatpush3.bf16.msra.mxu0 %v1150_v11 }
 0x209   : > { %1067 = vmatpush3.bf16.msra.mxu1 %v1143_v4  ;;  %1086 = vmatprep.subr.bf16.mxu0 %v1182_v62 }
 0x20a   : > { %1068 = vmatprep.subr.bf16.mxu1 %v1182_v62 }
 0x20c   : > { %1087 = vmatpush3.bf16.msra.mxu0 %v1151_v12 }
 0x20d   : > { %1069 = vmatpush3.bf16.msra.mxu1 %v1144_v5  ;;  %1088 = vmatprep.subr.bf16.mxu0 %v1182_v62 }
 0x20e   : > { %1070 = vmatprep.subr.bf16.mxu1 %v1182_v62 }
 0x210   : > { %1089 = vmatpush3.bf16.msra.mxu0 %v1152_v21 }
 0x211   : > { %1071 = vmatpush3.bf16.msra.mxu1 %v1145_v6  ;;  %1090 = vmatprep.subr.bf16.mxu0 %v1182_v62 }
 0x212   : > { %1072 = vmatprep.subr.bf16.mxu1 %v1182_v62 }
 0x214   : > { %1091 = vmatpush3.bf16.msra.mxu0 %v1153_v22 }
 0x215   : > { %1073 = vmatpush3.bf16.msra.mxu1 %v1146_v7  ;;  %1092 = vmatprep.subr.bf16.mxu0 %v1182_v62 }
 0x216   : > { %1074 = vmatprep.subr.bf16.mxu1 %v1182_v62 }
 0x218   : > { %1093 = vmatpush3.bf16.msra.mxu0 %v1154_v23 }
 0x219   : > { %1075 = vmatpush3.bf16.msra.mxu1 %v1147_v8  ;;  %1094 = vmatprep.subr.bf16.mxu0 %v1182_v62 }
 0x21c   : > { %1095 = vmatpush3.bf16.msra.mxu0 %v1155_v24 }
 0x2d2   : > { %v631_v14 = vpop.f32.mrb[0].mxu0 }
 0x2d3   : > { %v632_v15 = vadd.f32 %v970_v13, %v631_v14  ;;  %v1058_v16 = vpop.f32.mrb[1].mxu0 }
 0x2d4   : > { %v634_v17 = vpop.f32.mrb[2].mxu0 }
 0x2d5   : > { %v637_v18 = vmax.f32 %v632_v15, 0.0  ;;  %v1059_v19 = vpop.f32.mrb[3].mxu0 }
 0x2d7   : > { %v638_v20 = vpack.c.bf16 %v637_v18, %v637_v18 }
 0x2d9   : > { %1077 = vmatmul.mubr.bf16.vlgmr.msra.gmra.mrb[0].mxu1 %v638_v20 }
 0x3ac   : > { %v744_v26 = vpop.f32.mrb[0].mxu1 }
 0x3ad   : > { %v745_v27 = vadd.f32 %v973_v25, %v744_v26  ;;  %v1078_v28 = vpop.f32.mrb[1].mxu1 }
 0x3ae   : > { %v747_v29 = vpop.f32.mrb[2].mxu1 }
 0x3af   : > { %v750_v30 = vmax.f32 %v745_v27, 0.0  ;;  %v1079_v31 = vpop.f32.mrb[3].mxu1 }
 0x3b1   : > { %v751_v32 = vpack.c.bf16 %v750_v30, %v750_v30 }
 0x3b3   : > { %v752_v34 = vunpack.c.l.bf16 %v751_v32 }
 0x3b5   : > { %v760_v36 = vmul.f32 %v982_v33, %v752_v34 }
 0x3b7   : > { %v768_v37 = vadd.f32 %v983_v35, %v760_v36 }
 0x3b9   : > { %v786_v38 = vpack.c.bf16 %v768_v37, %v768_v37 }
 0x3bb   : > { %1097 = vmatmul.mubr.bf16.vlgmr.msra.gmra.mrb[4].mxu0 %v786_v38 }
 0x48e   : > { %v875_v40 = vpop.f32.mrb[4].mxu0 }
 0x48f   : > { %v876_v41 = vadd.f32 %v984_v39, %v875_v40  ;;  %v1098_v42 = vpop.f32.mrb[5].mxu0 }
 0x490   : > { %v878_v43 = vpop.f32.mrb[6].mxu0 }
 0x491   : > { %882 = vst.msk [vmem:[%s1402_s9] sm:$0xff] %vm881_vm4, %v876_v41  ;;  %v1099_v44 = vpop.f32.mrb[7].mxu0 }
 0x492 PF: > { %s19_s11 = sadd.s32 1, %s1178_s11   ;;  %s1403_s30 = smov %s1174_s10 }
 0x493   : > { %p16_p6 = scmp.ge.s32.totalorder %s19_s11, 4   ;;  %s1404_s10 = smov %s1406_s12 }
 0x495   :  { %18 = sbr.rel (!%p16_p6) target bundleno = 2 (0x2), region = 102 }

</bundles_post_ra>
